<compile_context>
chip_gen: v7x
topology: tpu7x:2x2x1
jax: 0.10.0
libtpu: 0.0.40
codegen_flags: <defaults>
</compile_context>

<pallas_src>
import jax
import jax.numpy as jnp
from jax.experimental import pallas as pl
from jax.experimental.pallas import tpu as pltpu

_LANES = 128
_SUBLANES = 8
_ROW_TILE = 512                   # ~85% of HBM roofline per measured sweep
_VMEM_LIMIT = 32 * 1024 * 1024    # safe on v5e/v6e/v7x; blocks below are << this


def _round_up(x, m):
    return -(-x // m) * m


def _plan_row_tiles(rows, tr_max=_ROW_TILE):
    """Pad `rows` to a multiple of 8 and pick a row tile.

    rows <= tr_max  -> one full block (the batch axis supplies grid steps).
    rows  > tr_max  -> ~equal tiles of at most tr_max rows, each a multiple of
                       8; total padding <= 8 rows per tile.
    Returns (rows_padded, tile_rows) with rows_padded % tile_rows == 0.
    """
    rows_p = _round_up(rows, _SUBLANES)
    if rows_p <= tr_max:
        return rows_p, rows_p
    ntiles = -(-rows_p // tr_max)
    tr = _round_up(-(-rows_p // ntiles), _SUBLANES)
    return tr * ntiles, tr


# ----------------------------------------------------------------------------
# Pallas kernel 1: affine vertex transform (mesh_utils.apply_transform)
#   cam_xyz = cTw[:3, :3] @ world_xyz + cTw[:3, 3]
# Done as SMEM-scalar * lane-dense-vector FMAs on the VPU (no MXU).
# ----------------------------------------------------------------------------
def _apply_transform_kernel(ctw_ref, v_ref, o_ref):
    # ctw_ref: (B, 16) f32, SMEM  — row-major flattened 4x4 per batch
    # v_ref:   (1, 3, TR, 128) VMEM — world-space x/y/z vertex tiles
    # o_ref:   (1, 3, TR, 128) VMEM — camera-space x/y/z vertex tiles
    b = pl.program_id(0)  # grid dim 0 == batch (see pallas_call below)
    x = v_ref[0, 0]
    y = v_ref[0, 1]
    z = v_ref[0, 2]
    for i in range(3):  # unrolled at trace time: 9 vmul + 9 vadd, all VPU
        o_ref[0, i] = (ctw_ref[b, 4 * i + 0] * x
                       + ctw_ref[b, 4 * i + 1] * y
                       + ctw_ref[b, 4 * i + 2] * z
                       + ctw_ref[b, 4 * i + 3])


def apply_transform(verts_cm, cTw):
    """verts_cm: (B, 3, V) channel-major world vertices; cTw: (B, 4, 4).

    Returns camera-space vertices, channel-major (B, 3, V).
    """
    B, C, V = verts_cm.shape
    assert C == 3
    verts_cm = verts_cm.astype(jnp.float32)
    ctw_flat = cTw.astype(jnp.float32).reshape(B, 16)

    rows = -(-V // _LANES)
    rows_p, tr = _plan_row_tiles(rows)
    Vp = rows_p * _LANES
    if Vp != V:
        verts_cm = jnp.pad(verts_cm, ((0, 0), (0, 0), (0, Vp - V)))
    v4 = verts_cm.reshape(B, 3, rows_p, _LANES)  # contiguous reshape: no data move

    out = pl.pallas_call(
        _apply_transform_kernel,
        out_shape=jax.ShapeDtypeStruct((B, 3, rows_p, _LANES), jnp.float32),
        grid=(B, rows_p // tr),
        in_specs=[
            pl.BlockSpec(memory_space=pltpu.MemorySpace.SMEM),            # cTw scalars
            pl.BlockSpec((1, 3, tr, _LANES), lambda b, r: (b, 0, r, 0)),  # verts
        ],
        out_specs=pl.BlockSpec((1, 3, tr, _LANES), lambda b, r: (b, 0, r, 0)),
        compiler_params=pltpu.CompilerParams(
            dimension_semantics=("parallel", "parallel"),
            vmem_limit_bytes=_VMEM_LIMIT),
    )(ctw_flat, v4)

    out = out.reshape(B, 3, Vp)
    return out[:, :, :V] if Vp != V else out


# ----------------------------------------------------------------------------
# Pallas kernel 2: depth scaling + mask/far compositing
#   depth <- mask * (wTc_scale * depth) + (1 - mask) * far
# (Strictly HBM-bound elementwise work; tiny images skip the kernel entirely
#  and let XLA fuse the expression.)
# ----------------------------------------------------------------------------
def _depth_postprocess_kernel(scale_ref, far_ref, depth_ref, mask_ref, out_ref):
    # scale_ref: (B,) f32 SMEM — per-batch 1 / mean(cTw scale)
    # far_ref:   (1,) f32 SMEM — far plane (SMEM operand, not a trace constant)
    # depth/mask/out: (1, TR, 128) VMEM tiles of the flattened image
    b = pl.program_id(0)  # grid dim 0 == batch (see pallas_call below)
    s = scale_ref[b]
    far = far_ref[0]
    m = mask_ref[...]
    out_ref[...] = m * (s * depth_ref[...]) + (1.0 - m) * far


def depth_postprocess(depth, mask, wTc_scale, far):
    """depth, mask: (B, 1, H, W) NCHW; wTc_scale: (B,); far: scalar."""
    B, C, H, W = depth.shape
    assert C == 1
    HW = H * W
    rows = -(-HW // _LANES)
    d = depth.reshape(B, HW).astype(jnp.float32)
    m = mask.reshape(B, HW).astype(jnp.float32)
    far_f = jnp.asarray(far, jnp.float32)

    # Tiny images: blocks would have <8 populated sublanes and custom-call +
    # per-step overhead dwarfs the few KiB of traffic — let XLA fuse it.
    if rows < _SUBLANES:
        s = wTc_scale.astype(jnp.float32)[:, None]
        out = m * (s * d) + (1.0 - m) * far_f
        return out.reshape(B, 1, H, W)

    rows_p, tr = _plan_row_tiles(rows)
    HWp = rows_p * _LANES
    if HWp != HW:
        d = jnp.pad(d, ((0, 0), (0, HWp - HW)))
        m = jnp.pad(m, ((0, 0), (0, HWp - HW)))
    d = d.reshape(B, rows_p, _LANES)
    m = m.reshape(B, rows_p, _LANES)

    out = pl.pallas_call(
        _depth_postprocess_kernel,
        out_shape=jax.ShapeDtypeStruct((B, rows_p, _LANES), jnp.float32),
        grid=(B, rows_p // tr),
        in_specs=[
            pl.BlockSpec(memory_space=pltpu.MemorySpace.SMEM),      # wTc_scale
            pl.BlockSpec(memory_space=pltpu.MemorySpace.SMEM),      # far
            pl.BlockSpec((1, tr, _LANES), lambda b, r: (b, r, 0)),  # depth
            pl.BlockSpec((1, tr, _LANES), lambda b, r: (b, r, 0)),  # mask
        ],
        out_specs=pl.BlockSpec((1, tr, _LANES), lambda b, r: (b, r, 0)),
        compiler_params=pltpu.CompilerParams(
            dimension_semantics=("parallel", "parallel"),
            vmem_limit_bytes=_VMEM_LIMIT),
    )(wTc_scale.astype(jnp.float32), far_f.reshape(1), d, m)

    out = out.reshape(B, HWp)[:, :HW]
    return out.reshape(B, 1, H, W)


# ----------------------------------------------------------------------------
# Glue: camera construction (mesh_utils.intr_from_screen_to_ndc / get_fxfy_pxpy)
# Only parameterizes the (untranslatable) rasterizer, so plain JAX glue.
# ----------------------------------------------------------------------------
def get_cameras(pix_intr, H, W):
    fx = pix_intr[:, 0, 0]
    fy = pix_intr[:, 1, 1]
    px = pix_intr[:, 0, 2]
    py = pix_intr[:, 1, 2]
    fx_ndc = 2.0 * fx / W
    fy_ndc = 2.0 * fy / H
    px_ndc = -(2.0 * px / W - 1.0)
    py_ndc = -(2.0 * py / H - 1.0)
    focal = jnp.stack([fx_ndc, fy_ndc], axis=-1)      # (B, 2)
    principal = jnp.stack([px_ndc, py_ndc], axis=-1)  # (B, 2)
    return {"focal_length": focal, "principal_point": principal}


# ----------------------------------------------------------------------------
# MeshRenderer.forward
# ----------------------------------------------------------------------------
def mesh_renderer_forward(cTw, pix_intr, verts_cm, H, W, far,
                          raster_depth, raster_mask, soft=True, uv_mode=True):
    cameras = get_cameras(pix_intr, H, W)                      # cTw=None branch

    # cMeshes = mesh_utils.apply_transform(meshes, cTw)  -> Pallas kernel 1
    cam_verts = apply_transform(verts_cm, cTw)                 # (B, 3, V) channel-major

    # TODO(synk): mesh_utils.render_soft / render_mesh (PyTorch3D differentiable
    # rasterization producing rgb/depth/normal/xy/uv/mask) has no clean Pallas
    # equivalent; raster_depth / raster_mask stand in for its raw outputs.

    # with torch.no_grad(): _, _, cTw_scale = homo_to_rt(cTw); wTc_scale = 1/mean
    rot_scale = jax.lax.stop_gradient(cTw[:, :3, :3].astype(jnp.float32))
    cTw_scale = jnp.linalg.norm(rot_scale, axis=-2)            # (B, 3) column norms
    wTc_scale = 1.0 / jnp.mean(cTw_scale, axis=-1)             # (B,)

    # image['depth'] = wTc_scale * depth ; depth = mask*depth + (1-mask)*far
    depth = depth_postprocess(raster_depth, raster_mask, wTc_scale, far)

    image = {
        "depth": depth,            # (B, 1, H, W)
        "mask": raster_mask,       # (B, 1, H, W)
        "verts_cam": cam_verts,    # (B, 3, V) camera-space vertices, channel-major
        "cameras": cameras,
    }
    return image


# ----------------------------------------------------------------------------
if __name__ == "__main__":
    key = jax.random.PRNGKey(0)
    B, V = 2, 2000            # V not a multiple of 128 -> exercises padding
    far = 3.0

    k1, k2, k3, k4, k5, k6 = jax.random.split(key, 6)

    # mesh vertices (world space), channel-major (B, 3, V)
    verts_cm = jax.random.normal(k1, (B, 3, V), dtype=jnp.float32)

    # cTw: scaled rotation about z + translation, bottom row [0,0,0,1]
    scale = 0.5 + jax.random.uniform(k2, (B, 1, 1), dtype=jnp.float32)
    theta = jax.random.uniform(k3, (B,), dtype=jnp.float32) * 2.0 * jnp.pi
    c, s = jnp.cos(theta), jnp.sin(theta)
    z = jnp.zeros_like(c)
    o = jnp.ones_like(c)
    R = jnp.stack(
        [jnp.stack([c, -s, z], -1),
         jnp.stack([s, c, z], -1),
         jnp.stack([z, z, o], -1)], axis=-2)                   # (B, 3, 3)
    t = jax.random.normal(k4, (B, 3, 1), dtype=jnp.float32)
    top = jnp.concatenate([R * scale, t], axis=-1)             # (B, 3, 4)
    bottom = jnp.tile(jnp.asarray([[[0.0, 0.0, 0.0, 1.0]]], jnp.float32), (B, 1, 1))
    cTw = jnp.concatenate([top, bottom], axis=-2)              # (B, 4, 4)

    def run_and_check(H, W):
        # pixel-space intrinsics
        fx = fy = 1.2 * W
        pix_intr = jnp.tile(
            jnp.asarray([[[fx, 0.0, W / 2.0],
                          [0.0, fy, H / 2.0],
                          [0.0, 0.0, 1.0]]], jnp.float32), (B, 1, 1))

        # synthetic rasterizer outputs (see TODO(synk) above)
        kd, km = jax.random.split(jax.random.fold_in(k5, H), 2)
        raster_depth = 1.0 + 2.0 * jax.random.uniform(kd, (B, 1, H, W), jnp.float32)
        raster_mask = (jax.random.uniform(km, (B, 1, H, W)) > 0.5).astype(jnp.float32)

        image = mesh_renderer_forward(cTw, pix_intr, verts_cm, H, W, far,
                                      raster_depth, raster_mask)
        jax.block_until_ready(image)

        # ---- correctness check vs. pure-JAX reference -----------------------
        ref_verts = (jnp.einsum("bij,bjv->biv", cTw[:, :3, :3], verts_cm)
                     + cTw[:, :3, 3:])
        rot = jax.lax.stop_gradient(cTw[:, :3, :3])
        wTc_scale_ref = 1.0 / jnp.mean(jnp.linalg.norm(rot, axis=-2), axis=-1)
        sc = wTc_scale_ref[:, None, None, None]
        ref_depth = raster_mask * (sc * raster_depth) + (1.0 - raster_mask) * far

        ok_v = bool(jnp.allclose(image["verts_cam"], ref_verts, rtol=1e-4, atol=1e-4))
        ok_d = bool(jnp.allclose(image["depth"], ref_depth, rtol=1e-4, atol=1e-4))
        assert ok_v, f"vertex transform mismatch vs. reference (H=W={H})"
        assert ok_d, f"depth compositing mismatch vs. reference (H=W={H})"

    run_and_check(64, 64)   # exercises the Pallas depth kernel (rows >= 8)
    run_and_check(16, 16)   # exercises the tiny-image XLA-fusion fallback

    print("KERNEL_OK")
</pallas_src>

<mosaic_0001>
module attributes {stable_mosaic.version = 11 : i64} {
  func.func @_apply_transform_kernel(%arg0: i32, %arg1: i32, %arg2: memref<2x16xf32, #tpu.memory_space<smem>>, %arg3: memref<1x3x16x128xf32, #tpu.memory_space<vmem>>, %arg4: memref<1x3x16x128xf32, #tpu.memory_space<vmem>>) attributes {dimension_semantics = [#tpu.dimension_semantics<parallel>, #tpu.dimension_semantics<parallel>], iteration_bounds = array<i64: 2, 1>, scalar_prefetch = 0 : i64, scratch_operands = 0 : i64, tpu.core_type = #tpu.core_type<tc>, window_params = [{transform_indices = @transform_0, window_bounds = array<i64: 2, 16>}, {transform_indices = @transform_1, window_bounds = array<i64: 1, 3, 16, 128>}, {transform_indices = @transform_2, window_bounds = array<i64: 1, 3, 16, 128>}]} {
    %c0 = arith.constant 0 : index
    %c0_0 = arith.constant 0 : index
    %c0_1 = arith.constant 0 : index
    %c0_2 = arith.constant 0 : index
    %0 = vector.load %arg3[%c0, %c0_0, %c0_1, %c0_2] : memref<1x3x16x128xf32, #tpu.memory_space<vmem>>, vector<1x1x16x128xf32>
    %1 = vector.shape_cast %0 : vector<1x1x16x128xf32> to vector<16x128xf32>
    %c0_3 = arith.constant 0 : index
    %c1 = arith.constant 1 : index
    %c0_4 = arith.constant 0 : index
    %c0_5 = arith.constant 0 : index
    %2 = vector.load %arg3[%c0_3, %c1, %c0_4, %c0_5] : memref<1x3x16x128xf32, #tpu.memory_space<vmem>>, vector<1x1x16x128xf32>
    %3 = vector.shape_cast %2 : vector<1x1x16x128xf32> to vector<16x128xf32>
    %c0_6 = arith.constant 0 : index
    %c2 = arith.constant 2 : index
    %c0_7 = arith.constant 0 : index
    %c0_8 = arith.constant 0 : index
    %4 = vector.load %arg3[%c0_6, %c2, %c0_7, %c0_8] : memref<1x3x16x128xf32, #tpu.memory_space<vmem>>, vector<1x1x16x128xf32>
    %5 = vector.shape_cast %4 : vector<1x1x16x128xf32> to vector<16x128xf32>
    %6 = arith.index_cast %arg0 : i32 to index
    %c0_9 = arith.constant 0 : index
    %7 = memref.load %arg2[%6, %c0_9] : memref<2x16xf32, #tpu.memory_space<smem>>
    %8 = vector.broadcast %7 : f32 to vector<16x128xf32>
    %9 = arith.mulf %8, %1 : vector<16x128xf32>
    %10 = arith.index_cast %arg0 : i32 to index
    %c1_10 = arith.constant 1 : index
    %11 = memref.load %arg2[%10, %c1_10] : memref<2x16xf32, #tpu.memory_space<smem>>
    %12 = vector.broadcast %11 : f32 to vector<16x128xf32>
    %13 = arith.mulf %12, %3 : vector<16x128xf32>
    %14 = arith.addf %9, %13 : vector<16x128xf32>
    %15 = arith.index_cast %arg0 : i32 to index
    %c2_11 = arith.constant 2 : index
    %16 = memref.load %arg2[%15, %c2_11] : memref<2x16xf32, #tpu.memory_space<smem>>
    %17 = vector.broadcast %16 : f32 to vector<16x128xf32>
    %18 = arith.mulf %17, %5 : vector<16x128xf32>
    %19 = arith.addf %14, %18 : vector<16x128xf32>
    %20 = arith.index_cast %arg0 : i32 to index
    %c3 = arith.constant 3 : index
    %21 = memref.load %arg2[%20, %c3] : memref<2x16xf32, #tpu.memory_space<smem>>
    %22 = vector.broadcast %21 : f32 to vector<16x128xf32>
    %23 = arith.addf %19, %22 : vector<16x128xf32>
    %c0_12 = arith.constant 0 : index
    %c0_13 = arith.constant 0 : index
    %c0_14 = arith.constant 0 : index
    %c0_15 = arith.constant 0 : index
    %24 = vector.load %arg4[%c0_12, %c0_13, %c0_14, %c0_15] : memref<1x3x16x128xf32, #tpu.memory_space<vmem>>, vector<1x1x16x128xf32>
    %25 = vector.shape_cast %24 : vector<1x1x16x128xf32> to vector<16x128xf32>
    %26 = vector.shape_cast %23 : vector<16x128xf32> to vector<1x1x16x128xf32>
    tpu.vector_store %arg4[%c0_12, %c0_13, %c0_14, %c0_15], %26 {strides = array<i32>} : memref<1x3x16x128xf32, #tpu.memory_space<vmem>>, vector<1x1x16x128xf32>,
    %27 = arith.index_cast %arg0 : i32 to index
    %c4 = arith.constant 4 : index
    %28 = memref.load %arg2[%27, %c4] : memref<2x16xf32, #tpu.memory_space<smem>>
    %29 = vector.broadcast %28 : f32 to vector<16x128xf32>
    %30 = arith.mulf %29, %1 : vector<16x128xf32>
    %31 = arith.index_cast %arg0 : i32 to index
    %c5 = arith.constant 5 : index
    %32 = memref.load %arg2[%31, %c5] : memref<2x16xf32, #tpu.memory_space<smem>>
    %33 = vector.broadcast %32 : f32 to vector<16x128xf32>
    %34 = arith.mulf %33, %3 : vector<16x128xf32>
    %35 = arith.addf %30, %34 : vector<16x128xf32>
    %36 = arith.index_cast %arg0 : i32 to index
    %c6 = arith.constant 6 : index
    %37 = memref.load %arg2[%36, %c6] : memref<2x16xf32, #tpu.memory_space<smem>>
    %38 = vector.broadcast %37 : f32 to vector<16x128xf32>
    %39 = arith.mulf %38, %5 : vector<16x128xf32>
    %40 = arith.addf %35, %39 : vector<16x128xf32>
    %41 = arith.index_cast %arg0 : i32 to index
    %c7 = arith.constant 7 : index
    %42 = memref.load %arg2[%41, %c7] : memref<2x16xf32, #tpu.memory_space<smem>>
    %43 = vector.broadcast %42 : f32 to vector<16x128xf32>
    %44 = arith.addf %40, %43 : vector<16x128xf32>
    %c0_16 = arith.constant 0 : index
    %c1_17 = arith.constant 1 : index
    %c0_18 = arith.constant 0 : index
    %c0_19 = arith.constant 0 : index
    %45 = vector.load %arg4[%c0_16, %c1_17, %c0_18, %c0_19] : memref<1x3x16x128xf32, #tpu.memory_space<vmem>>, vector<1x1x16x128xf32>
    %46 = vector.shape_cast %45 : vector<1x1x16x128xf32> to vector<16x128xf32>
    %47 = vector.shape_cast %44 : vector<16x128xf32> to vector<1x1x16x128xf32>
    tpu.vector_store %arg4[%c0_16, %c1_17, %c0_18, %c0_19], %47 {strides = array<i32>} : memref<1x3x16x128xf32, #tpu.memory_space<vmem>>, vector<1x1x16x128xf32>,
    %48 = arith.index_cast %arg0 : i32 to index
    %c8 = arith.constant 8 : index
    %49 = memref.load %arg2[%48, %c8] : memref<2x16xf32, #tpu.memory_space<smem>>
    %50 = vector.broadcast %49 : f32 to vector<16x128xf32>
    %51 = arith.mulf %50, %1 : vector<16x128xf32>
    %52 = arith.index_cast %arg0 : i32 to index
    %c9 = arith.constant 9 : index
    %53 = memref.load %arg2[%52, %c9] : memref<2x16xf32, #tpu.memory_space<smem>>
    %54 = vector.broadcast %53 : f32 to vector<16x128xf32>
    %55 = arith.mulf %54, %3 : vector<16x128xf32>
    %56 = arith.addf %51, %55 : vector<16x128xf32>
    %57 = arith.index_cast %arg0 : i32 to index
    %c10 = arith.constant 10 : index
    %58 = memref.load %arg2[%57, %c10] : memref<2x16xf32, #tpu.memory_space<smem>>
    %59 = vector.broadcast %58 : f32 to vector<16x128xf32>
    %60 = arith.mulf %59, %5 : vector<16x128xf32>
    %61 = arith.addf %56, %60 : vector<16x128xf32>
    %62 = arith.index_cast %arg0 : i32 to index
    %c11 = arith.constant 11 : index
    %63 = memref.load %arg2[%62, %c11] : memref<2x16xf32, #tpu.memory_space<smem>>
    %64 = vector.broadcast %63 : f32 to vector<16x128xf32>
    %65 = arith.addf %61, %64 : vector<16x128xf32>
    %c0_20 = arith.constant 0 : index
    %c2_21 = arith.constant 2 : index
    %c0_22 = arith.constant 0 : index
    %c0_23 = arith.constant 0 : index
    %66 = vector.load %arg4[%c0_20, %c2_21, %c0_22, %c0_23] : memref<1x3x16x128xf32, #tpu.memory_space<vmem>>, vector<1x1x16x128xf32>
    %67 = vector.shape_cast %66 : vector<1x1x16x128xf32> to vector<16x128xf32>
    %68 = vector.shape_cast %65 : vector<16x128xf32> to vector<1x1x16x128xf32>
    tpu.vector_store %arg4[%c0_20, %c2_21, %c0_22, %c0_23], %68 {strides = array<i32>} : memref<1x3x16x128xf32, #tpu.memory_space<vmem>>, vector<1x1x16x128xf32>,
    return
  }
  func.func @transform_0(%arg0: i32, %arg1: i32) -> (i32, i32) {
    %c0_i32 = arith.constant 0 : i32
    %c0_i32_0 = arith.constant 0 : i32
    %c0_i32_1 = arith.constant 0 : i32
    return %c0_i32, %c0_i32_0 : i32, i32
  }
  func.func @transform_1(%arg0: i32, %arg1: i32) -> (i32, i32, i32, i32) {
    %c0_i32 = arith.constant 0 : i32
    %c0_i32_0 = arith.constant 0 : i32
    %c0_i32_1 = arith.constant 0 : i32
    return %arg0, %c0_i32, %arg1, %c0_i32_0 : i32, i32, i32, i32
  }
  func.func @transform_2(%arg0: i32, %arg1: i32) -> (i32, i32, i32, i32) {
    %c0_i32 = arith.constant 0 : i32
    %c0_i32_0 = arith.constant 0 : i32
    %c0_i32_1 = arith.constant 0 : i32
    return %arg0, %c0_i32, %arg1, %c0_i32_0 : i32, i32, i32, i32
  }
}

</mosaic_0001>

<bundles_post_ra>
// kernel: tpu_custom_call.1
= control target key start
LH: loop header
LB: loop body
LE: loop exit
PB: predicated region body
PF: predicated region fallthrough
CT: control target
= control target key end

     0   :  { %7 = vsyncpa [#allocation5], 0  ;;  %s907_s0 = inlined_call_operand.hbm [shape: f32[2,16], index: 0, kind: input, shape index: {}]   ;;  %s908_s1 = inlined_call_operand.hbm [shape: f32[2,3,16,128], index: 1, kind: input, shape index: {}]   ;;  %s909_s2 = inlined_call_operand.hbm [shape: f32[2,3,16,128], index: 2, kind: output, shape index: {}]  }
   0x1   :  { %8 = vsyncpa [#allocation3], 0 }
   0x2   :  { %10 = vsyncpa [#allocation3 + $0x1], 0 }
   0x3   :  { %11 = vsyncpa [#allocation4], 0 }
   0x4   :  { %13 = vsyncpa [#allocation4 + $0x1], 0  ;;  %s651_s9 = smov 0   ;;  %s653_s10 = smov 0  }
   0x5   :  { %s655_s11 = smov 0   ;;  %s657_s12 = smov 0  }
   0x6   :  { %s659_s13 = smov 0   ;;  %s661_s14 = smov 0  }
   0x7 LB: > { %s397_s15 = sadd.s32 4294967295, %s627_s14   ;;  %s398_s16 = sadd.s32 4294967294, %s627_s14   ;;  %s627_s14 = sphi %s661_s14, %s19_s14   ;;  %s623_s13 = sphi %s659_s13, %s929_s13   ;;  %s619_s12 = sphi %s657_s12, %s928_s12   ;;  %s615_s11 = sphi %s655_s11, %s927_s11   ;;  %s611_s10 = sphi %s653_s10, %s926_s10   ;;  %s607_s9 = sphi %s651_s9, %s925_s9  }
   0x8   : > { %s61_s17 = sadd.s32 1, %s615_s11  ;;  %p68_p0 = scmp.ne.s32.totalorder %s615_s11, %s611_s10 }
   0x9   : > { %p69_p1 = scmp.eq.s32.totalorder %s627_s14, 0  ;;  %p74_p2 = scmp.ne.s32.totalorder %s611_s10, %s607_s9 }
   0xa   : > { %p689_p3 = scmp.eq.s32.totalorder %s397_s15, 0  ;;  %p100_p4 = scmp.eq.s32.totalorder %s397_s15, 1 }
   0xb   : > { %p70_p5 = por %p69_p1, %p68_p0  ;;  %p106_p6 = scmp.eq.s32.totalorder %s398_s16, 1 }
   0xc   : > { %s914_s18 = scalar_select %p689_p3, 1, 0 }
   0xd   : > { %p695_p7 = por %p689_p3, %p74_p2  ;;  %p699_p8 = por %p100_p4, %p68_p0 }
   0xe   : > { %p703_p9 = por %p106_p6, %p74_p2  ;;  %p399_p10 = scmp.ge.s32.totalorder %s627_s14, 1 }
   0xf   : > { %s915_s19 = scalar_select %p695_p7, 1, 0 }
  0x10   : > { %s916_s20 = scalar_select %p699_p8, 1, 0 }
  0x11   : > { %s917_s21 = scalar_select %p703_p9, 1, 0 }
  0x12   : > { %p113_p11 = scmp.lt.s32.totalorder %s627_s14, 3  ;;  %p442_p1 = scmp.lt.s32.totalorder %s627_s14, 2 }
  0x13   : > { %s135_s23 = sand.u32 1, %s615_s11   ;;  %s31_s25 = sadd.s32 1, %s623_s13 }
  0x14   : > { %p710_p13 = pnand %p399_p10, %p113_p11  ;;  %p718_p0 = pnand %p442_p1, %p70_p5 }
  0x15   : > { %s417_s26 = smul.u32 48, %s135_s23  ;;  %p33_p4 = scmp.ge.s32.totalorder %s31_s25, 2 }
  0x16   : > { %p429_p7 = pneg %p710_p13  ;;  %s498_s29 = scalar_lea.hbm %s907_s0, 32 }
  0x17   : > { %p499_p6 = scmp.ne.s32.totalorder %s907_s0, %s498_s29  ;;  %p505_p5 = scmp.lt.u32.totalorder %s498_s29, %s907_s0 }
  0x18   : > { %p430_p2 = pnand %p429_p7, %p689_p3 }
  0x1a   : > { %p500_p10 = pneg %p430_p2 }
  0x1c   : > { %p501_p11 = pnand %p500_p10, %p499_p6 }
  0x1e   : > { %p502_p12 = pneg %p501_p11 }
  0x20   : > { %p507_p1 = pnand %p505_p5, %p502_p12 }
  0x22   : > { %510 = shalt.err (!%p507_p1)
}
  0x23   : > { %s629_s6 = smov [#allocation2]   ;;  %s931_s25 = smov (%p33_p4, %s31_s25), 0 }
  0x24   : > { %432 = dma.hbm_to_smem (!%p430_p2), %s907_s0, 32, %s629_s6, [#allocation5]  }
  0x25   : > { %s418_s15 = smul.u32 768, %s623_s13  ;;  %s56_s16 = ssub.s32 %s623_s13, %s931_s25 }
  0x26   : > { %s139_s27 = scalar_lea.vmem [#allocation6], %s417_s26  ;;  %p59_p7 = scmp.eq.s32.totalorder %s56_s16, 0 }
  0x27   : > { %s148_s28 = sshll.u32 %s139_s27, 4  ;;  %s745_s3 = scalar_lea.hbm %s908_s1, %s418_s15  ;;  %s747_s28 = int_to_ptr.vmem [resolvable:$true] %s148_s28 }
  0x28   : > { %s752_s4 = scalar_select %p59_p7, %s615_s11, %s61_s17  }
  0x29   : > { %s754_s5 = scalar_lea.sflag [#allocation3], %s135_s23  ;;  %s511_s6 = scalar_lea.hbm %s745_s3, 768 }
  0x2a   : > { %p512_p12 = scmp.ne.s32.totalorder %s745_s3, %s511_s6  ;;  %p513_p2 = pneg %p718_p0 }
  0x2b   : > { %s516_s8 = scalar_lea.hbm %s908_s1, 1536  ;;  %p517_p10 = scmp.lt.u32.totalorder %s745_s3, %s908_s1 }
  0x2c   : > { %p514_p4 = pnand %p513_p2, %p512_p12  ;;  %p518_p11 = scmp.lt.u32.totalorder %s516_s8, %s511_s6 }
  0x2d   : > { %p520_p1 = scmp.lt.u32.totalorder %s511_s6, %s745_s3 }
  0x2e   : > { %p515_p6 = pneg %p514_p4  ;;  %p519_p5 = por %p518_p11, %p517_p10 }
  0x30   : > { %p521_p7 = por %p520_p1, %p519_p5 }
  0x32   : > { %p522_p9 = pnand %p521_p7, %p515_p6 }
  0x34   : > { %525 = shalt.err (!%p522_p9)
}
  0x35   : > { %s526_s17 = scalar_lea.vmem %s747_s28, 768  ;;  %s630_s23 = smov [#allocation6]  }
  0x36   : > { %p527_p12 = scmp.ne.s32.totalorder %s747_s28, %s526_s17  ;;  %s531_s27 = sshll.u32 %s630_s23, 4  ;;  %s532_s27 = int_to_ptr.vmem [resolvable:$false] %s531_s27 }
  0x37   : > { %s533_s29 = scalar_lea.vmem %s532_s27, 1536  ;;  %p534_p3 = scmp.lt.s32.totalorder %s747_s28, %s532_s27 }
  0x38   : > { %p529_p4 = pnand %p527_p12, %p513_p2  ;;  %p535_p10 = scmp.lt.s32.totalorder %s533_s29, %s526_s17 }
  0x3a   : > { %p530_p8 = pneg %p529_p4  ;;  %p536_p11 = por %p535_p10, %p534_p3 }
  0x3c   : > { %p537_p5 = pnand %p536_p11, %p530_p8 }
  0x3e   : > { %540 = shalt.err (!%p537_p5)
}
  0x3f   : > { %s631_s30 = smov 128   ;;  %s632_s6 = smov 8  }
  0x40   : > { %436 = dma.hbm_to_vmem [thread:$0]  (!%p718_p0), %s745_s3, 768, %s747_s28, %s754_s5, %s631_s30, %s631_s30, %s632_s6  }
  0x41   : > { %160 = sbr.rel (%p710_p13) target bundleno = 120 (0x78), region = 28  ;;  %p920_p9 = scmp.ne.s32.totalorder (!%p710_p13), %s914_s18, 0 }
  0x48   : > { %594 = dma.done.wait (%p920_p9), [#allocation5], 32  }
  0x49   : > { %596 = vsyncadd (%p920_p9), [#allocation5], 4294967264  ;;  %s789_s26 = sand.u32 1, %s611_s10   ;;  %p921_p3 = scmp.ne.s32.totalorder %s915_s19, 0 }
  0x4a   : > { %s419_s7 = smul.u32 48, %s789_s26  ;;  %s167_s8 = scalar_lea.sflag [#allocation3], %s789_s26 }
  0x4c   : > { %s170_s24 = scalar_lea.vmem [#allocation6], %s419_s7 }
  0x4d   : > { %598 = dma.done.wait (%p921_p3), %s167_s8, 768  }
  0x4e   : > { %600 = vsyncadd (%p921_p3), %s167_s8, 4294966528 }
  0x4f   : > { %175 = sfence }
  0x50   : > { %s800_s18 = sshll.u32 %s619_s12, 7  ;;  %v194_v0 = vld [vmem:[%s170_s24] sm:$0xff]  ;;  %v195_v1 = vld [vmem:[%s170_s24 + $0x8] sm:$0xff]  ;;  %v405_v2 = vld [vmem:[%s170_s24 + $0x10] sm:$0xff]  ;;  %p922_p13 = scmp.ne.s32.totalorder %s916_s20, 0 }
  0x51   : > { %s203_s22 = sld [smem:[#allocation2 + %s800_s18]]  ;;  %s207_s28 = sadd.s32 1, %s800_s18  ;;  %v406_v3 = vld [vmem:[%s170_s24 + $0x18] sm:$0xff]  ;;  %v407_v4 = vld [vmem:[%s170_s24 + $0x20] sm:$0xff]  ;;  %v408_v6 = vld [vmem:[%s170_s24 + $0x28] sm:$0xff] }
  0x52   : > { %s208_s3 = sld [smem:[#allocation2 + %s207_s28]]  ;;  %s214_s5 = sadd.s32 2, %s800_s18 }
  0x53   : > { %s215_s15 = sld [smem:[#allocation2 + %s214_s5]]  ;;  %s221_s16 = sadd.s32 3, %s800_s18 }
  0x54   : > { %s806_s17 = sld [smem:[#allocation2 + %s221_s16]]  ;;  %s228_s19 = sadd.s32 4, %s800_s18 }
  0x55   : > { %s809_s23 = sld [smem:[#allocation2 + %s228_s19]]  ;;  %s233_s27 = sadd.s32 5, %s800_s18 }
  0x56   : > { %s812_s29 = sld [smem:[#allocation2 + %s233_s27]]  ;;  %s240_s30 = sadd.s32 6, %s800_s18 }
  0x57   : > { %v204_v5 = vstv %s203_s22  ;;  %s815_s6 = sld [smem:[#allocation2 + %s240_s30]]  ;;  %s247_s8 = sadd.s32 7, %s800_s18 }
  0x58   : > { %v205_v7 = vmul.f32 %v204_v5, %v194_v0  ;;  %v209_v8 = vstv %s208_s3  ;;  %v206_v9 = vmul.f32 %v204_v5, %v195_v1  ;;  %s818_s28 = sld [smem:[#allocation2 + %s247_s8]]  ;;  %s255_s24 = sadd.s32 8, %s800_s18 }
  0x59   : > { %v210_v10 = vmul.f32 %v405_v2, %v209_v8  ;;  %v216_v11 = vstv %s215_s15  ;;  %v211_v12 = vmul.f32 %v406_v3, %v209_v8  ;;  %s821_s22 = sld [smem:[#allocation2 + %s255_s24]]  ;;  %s260_s3 = sadd.s32 9, %s800_s18 }
  0x5a   : > { %v217_v13 = vmul.f32 %v407_v4, %v216_v11  ;;  %v218_v14 = vmul.f32 %v408_v6, %v216_v11  ;;  %s824_s5 = sld [smem:[#allocation2 + %s260_s3]]  ;;  %s267_s16 = sadd.s32 10, %s800_s18  ;;  %v223_v17 = vstv %s806_s17 }
  0x5b   : > { %v212_v15 = vadd.f32 %v210_v10, %v205_v7  ;;  %v213_v16 = vadd.f32 %v211_v12, %v206_v9  ;;  %v230_v18 = vstv %s809_s23  ;;  %s829_s19 = sld [smem:[#allocation2 + %s267_s16]]  ;;  %s274_s15 = sadd.s32 11, %s800_s18 }
  0x5c   : > { %v231_v21 = vmul.f32 %v230_v18, %v194_v0  ;;  %v235_v22 = vstv %s812_s29  ;;  %s833_s27 = sld [smem:[#allocation2 + %s274_s15]]  ;;  %v232_v25 = vmul.f32 %v230_v18, %v195_v1  ;;  %s839_s18 = scalar_lea.vmem [#allocation7], %s419_s7 }
  0x5d   : > { %v219_v19 = vadd.f32 %v217_v13, %v212_v15  ;;  %v220_v20 = vadd.f32 %v218_v14, %v213_v16  ;;  %v236_v23 = vmul.f32 %v405_v2, %v235_v22  ;;  %v242_v24 = vstv %s815_s6  ;;  %s298_s7 = sshll.u32 %s839_s18, 4  ;;  %s420_s17 = smul.u32 768, %s619_s12  ;;  %s851_s7 = int_to_ptr.vmem [resolvable:$true] %s298_s7 }
  0x5e   : > { %v237_v26 = vmul.f32 %v406_v3, %v235_v22  ;;  %v243_v29 = vmul.f32 %v407_v4, %v242_v24  ;;  %v244_v32 = vmul.f32 %v408_v6, %v242_v24  ;;  %v249_v34 = vstv %s818_s28  ;;  %s283_s6 = scalar_lea.sflag [#allocation4], %s789_s26  ;;  %s541_s12 = scalar_lea.vmem %s851_s7, 768 }
  0x5f   : > { %v224_v27 = vadd.f32 %v223_v17, %v219_v19  ;;  %v225_v28 = vadd.f32 %v223_v17, %v220_v20  ;;  %v238_v30 = vadd.f32 %v236_v23, %v231_v21  ;;  %v257_v33 = vstv %s821_s22  ;;  %s856_s30 = scalar_lea.hbm %s909_s2, %s420_s17  ;;  %p542_p8 = scmp.ne.s32.totalorder %s851_s7, %s541_s12 }
  0x60   : > { %v239_v31 = vadd.f32 %v237_v26, %v232_v25  ;;  %v258_v35 = vmul.f32 %v257_v33, %v194_v0  ;;  %v262_v36 = vstv %s824_s5  ;;  %v259_v37 = vmul.f32 %v257_v33, %v195_v1  ;;  %s633_s8 = smov [#allocation7]  }
  0x61   : > { %226 = vst [vmem:[%s839_s18] sm:$0xff] %v224_v27  ;;  %227 = vst [vmem:[%s839_s18 + $0x8] sm:$0xff] %v225_v28  ;;  %v245_v38 = vadd.f32 %v243_v29, %v238_v30  ;;  %v263_v40 = vmul.f32 %v405_v2, %v262_v36  ;;  %v269_v41 = vstv %s829_s19  ;;  %v264_v43 = vmul.f32 %v406_v3, %v262_v36  ;;  %p543_p0 = pnand %p542_p8, %p922_p13  ;;  %s545_s28 = sshll.u32 %s633_s8, 4  ;;  %s546_s28 = int_to_ptr.vmem [resolvable:$false] %s545_s28 }
  0x62   : > { %v246_v39 = vadd.f32 %v244_v32, %v239_v31  ;;  %v270_v42 = vmul.f32 %v407_v4, %v269_v41  ;;  %v271_v44 = vmul.f32 %v408_v6, %v269_v41  ;;  %v276_v48 = vstv %s833_s27  ;;  %s547_s24 = scalar_lea.vmem %s546_s28, 1536  ;;  %p548_p6 = scmp.lt.s32.totalorder %s851_s7, %s546_s28 }
  0x63   : > { %v250_v45 = vadd.f32 %v249_v34, %v245_v38  ;;  %v265_v47 = vadd.f32 %v263_v40, %v258_v35  ;;  %v266_v49 = vadd.f32 %v264_v43, %v259_v37  ;;  %p544_p2 = pneg %p543_p0  ;;  %p549_p1 = scmp.lt.s32.totalorder %s547_s24, %s541_s12 }
  0x64   : > { %v251_v46 = vadd.f32 %v249_v34, %v246_v39 }
  0x65   : > { %410 = vst [vmem:[%s839_s18 + $0x10] sm:$0xff] %v250_v45  ;;  %v272_v50 = vadd.f32 %v270_v42, %v265_v47  ;;  %v273_v51 = vadd.f32 %v271_v44, %v266_v49  ;;  %p550_p7 = por %p549_p1, %p548_p6 }
  0x66   : > { %411 = vst [vmem:[%s839_s18 + $0x18] sm:$0xff] %v251_v46 }
  0x67   : > { %v277_v52 = vadd.f32 %v276_v48, %v272_v50  ;;  %v278_v53 = vadd.f32 %v276_v48, %v273_v51  ;;  %p551_p12 = pnand %p550_p7, %p544_p2 }
  0x69   : > { %412 = vst [vmem:[%s839_s18 + $0x20] sm:$0xff] %v277_v52  ;;  %413 = vst [vmem:[%s839_s18 + $0x28] sm:$0xff] %v278_v53 }
  0x6a   : > { %554 = shalt.err (!%p551_p12)
}
  0x6b   : > { %s555_s22 = scalar_lea.hbm %s856_s30, 768  ;;  %s559_s16 = scalar_lea.hbm %s909_s2, 1536 }
  0x6c   : > { %p556_p4 = scmp.ne.s32.totalorder %s856_s30, %s555_s22  ;;  %p560_p5 = scmp.lt.u32.totalorder %s856_s30, %s909_s2 }
  0x6d   : > { %p561_p9 = scmp.lt.u32.totalorder %s559_s16, %s555_s22  ;;  %p563_p8 = scmp.lt.u32.totalorder %s555_s22, %s856_s30 }
  0x6e   : > { %p557_p10 = pnand %p556_p4, %p922_p13 }
  0x6f   : > { %p562_p3 = por %p561_p9, %p560_p5 }
  0x70   : > { %p558_p11 = pneg %p557_p10 }
  0x71   : > { %p564_p0 = por %p563_p8, %p562_p3 }
  0x73   : > { %p565_p2 = pnand %p564_p0, %p558_p11 }
  0x75   : > { %568 = shalt.err (!%p565_p2)
}
  0x76   : > { %s634_s27 = smov 128   ;;  %s635_s18 = smov 8  }
  0x77   : > { %427 = dma.vmem_to_hbm [thread:$0]  (%p922_p13), %s851_s7, 768, %s856_s30, %s283_s6, %s634_s27, %s634_s27, %s635_s18  }
  0x78 PF: > { %s313_s17 = sand.u32 1, %s607_s9   ;;  %p923_p6 = scmp.ne.s32.totalorder %s917_s21, 0 }
  0x79   : > { %p924_p1 = scmp.ge.s32.totalorder %s627_s14, 2  ;;  %s314_s23 = scalar_lea.sflag [#allocation4], %s313_s17 }
  0x7b   : > { %p438_p7 = pnand %p924_p1, %p923_p6 }
  0x7d   : > { %602 = dma.done.wait (!%p438_p7), %s314_s23, 768  }
  0x7e   : > { %604 = vsyncadd (!%p438_p7), %s314_s23, 4294966528  ;;  %s19_s14 = sadd.s32 1, %s627_s14   ;;  %s925_s9 = smov %s611_s10 }
  0x7f   : > { %p16_p12 = scmp.ge.s32.totalorder %s19_s14, 4   ;;  %s926_s10 = smov %s615_s11 }
  0x80   : > { %s927_s11 = smov %s752_s4  ;;  %s928_s12 = smov %s623_s13 }
  0x81   : > { %s929_s13 = smov %s931_s25  ;;  %18 = sbr.rel (!%p16_p12) target bundleno = 7 (0x7), region = 82 }
  0x88   :  { %319 = vsyncpa [#allocation3], 1 }
  0x89   :  { %321 = vsyncpa [#allocation3 + $0x1], 1 }
  0x8a   :  { %322 = vsyncpa [#allocation4], 1 }
  0x8b   :  { %324 = vsyncpa [#allocation4 + $0x1], 1 }
  0x8c   :  { %325 = vsyncpa [#allocation5], 1 }
  0x8d   :  { %327 = vsyncpa [#allocation5 + $0x1], 1 }

</bundles_post_ra>
